<compile_context>
chip_gen: v7x
topology: tpu7x:2x2x1
jax: 0.10.0
libtpu: 0.0.40
codegen_flags: <defaults>
</compile_context>

<pallas_src>
import functools

import jax
import jax.numpy as jnp
from jax import lax
from jax.experimental import pallas as pl
from jax.experimental.pallas import tpu as pltpu


def _round_up(x, m):
    return ((x + m - 1) // m) * m


def _mapconv_kernel(n_kh, w_pad, x_ref, ratio_ref, w_ref, out_ref):
    """One (batch, row-tile, cout-tile) block.

    x_ref:     (L, Kf)        bf16  kw-folded (and kh-folded if n_kh==1) input slab,
                                    L = (th + 4*[n_kh==5]) * w_pad, Kf = n_taps*Cin
    ratio_ref: (tm, 1)        f32   mask_ratio in the padded-column frame (junk cols = 0)
    w_ref:     (n_kh, Kf, CT) bf16  combined conv weight, rows ordered (kw, cin) per kh
    out_ref:   (tm, CT)       f32   output block (junk cols / padded cout sliced outside)
    """
    tm = out_ref.shape[0]
    acc = None
    for kh in range(n_kh):
        if n_kh == 1:
            xs = x_ref[...]                              # single dot, K = 25*Cin
        else:
            xs = x_ref[pl.ds(kh * w_pad, tm), :]         # whole-row, sublane-aligned shift
        contrib = jnp.dot(xs, w_ref[kh], preferred_element_type=jnp.float32)
        acc = contrib if acc is None else acc + contrib  # value chain, no out_ref RMW
    # conv_bias=False branch: single fused store of relu(conved * mask_ratio).
    out_ref[...] = jnp.maximum(acc * ratio_ref[...], 0.0)


def _combine_weights(w3, w5, w1):
    """(conv3 + conv5 + conv1)/3 folded into a single 5x5 OIHW weight."""
    wc = w5 / 3.0
    wc = wc.at[:, :, 1:4, 1:4].add(w3 / 3.0)
    wc = wc.at[:, :, 2:3, 2:3].add(w1 / 3.0)
    return wc                                            # (Cout, Cin, 5, 5)


def _vmem_tile_bytes(rows, cols, itemsize):
    """Physical VMEM bytes of a (rows, cols) tile (sublane/lane padded)."""
    sub = 32 // itemsize                                 # 8 rows/vreg f32, 16 rows/vreg bf16
    return _round_up(max(rows, 1), sub) * _round_up(max(cols, 1), 128) * itemsize


def _choose_row_tile(h, w_pad, kf, ct, n_kh, n, n_j, tm_cap=4096, budget=20 << 20):
    """Row-tile height: big flat block, under the double-buffered VMEM budget."""
    halo = 4 if n_kh > 1 else 0
    th = max(1, min(h, tm_cap // max(w_pad, 1)))
    if n == 1 and n_j == 1 and h > 1:
        th = min(th, (h + 1) // 2)       # >= 2 row tiles -> both TCs busy on dual-TC chips
    while th > 1:
        tm = th * w_pad
        need = 2 * (_vmem_tile_bytes(tm + halo * w_pad, kf, 2)
                    + _vmem_tile_bytes(tm, 1, 4)
                    + _vmem_tile_bytes(tm, ct, 4))
        if need <= budget:
            break
        th -= 1
    return th


def map_conv_activ(layer_num, img, mask, w3, w5, w1):
    """MAPConvActiv forward.  img/mask: (N, Cin, H, W) float32 (NCHW)."""
    del layer_num                                        # dec=False -> no upcat path
    n, cin, h, w = img.shape
    cout = w3.shape[0]
    sum1 = float(cin * 9)

    # ---- static tiling decisions ----
    cout_p = _round_up(cout, 128)
    ct = 256 if (cout_p >= 256 and cout_p % 256 == 0) else 128   # v6e/v7x MXU is 256 wide
    n_j = cout_p // ct
    full_fold = (25 * cin) <= 128        # tiny Cin -> fold all 25 taps, single dot
    n_kh = 1 if full_fold else 5
    kf = (25 if full_fold else 5) * cin
    w_pad = _round_up(w + 4, 8)          # flattened row stride, sublane aligned
    th = _choose_row_tile(h, w_pad, kf, ct, n_kh, n, n_j)
    hp = _round_up(h, th)                # pad H instead of divisor-of-H tiling
    nt = hp // th
    tm = th * w_pad

    # glue: NCHW -> NHWC (boundary layout contract of the PyTorch module)
    img_nhwc = jnp.transpose(img, (0, 2, 3, 1))
    mask_nhwc = jnp.transpose(mask, (0, 2, 3, 1))
    x = img_nhwc * mask_nhwc                             # (N, H, W, Cin) f32

    # ---- mask path: tiny single-channel op, kept outside the kernel ----
    msum = jnp.sum(mask_nhwc, axis=-1)                   # (N, H, W)
    um = lax.reduce_window(msum, 0.0, lax.add, (1, 3, 3), (1, 1, 1),
                           [(0, 0), (1, 1), (1, 1)])     # update_mask (same for all Cout)
    um_clamped = jnp.clip(um, 0.0, 1.0)
    mask_ratio = sum1 / (um + 1e-8) * um_clamped         # f32 (N, H, W), bounded by sum1

    # ---- zero-padded input in the flattened-row frame ----
    # rows: 2 top halo + H + (bottom halo + H-tiling pad); cols: 2 left halo + W + right pad
    x_pad = jnp.pad(x, ((0, 0), (2, hp + 2 - h), (2, w_pad - 2 - w), (0, 0)))

    # ---- fold kw (and kh when 25*Cin<=128) into the K/channel dimension ----
    if full_fold:
        # im2col-in-channels: K = 25*Cin, non-overlapping row tiles (no halo duplication).
        pieces = []
        for kh in range(5):
            for kw in range(5):
                p = x_pad[:, kh:kh + hp, kw:, :]
                pieces.append(jnp.pad(p, ((0, 0), (0, 0), (0, kw), (0, 0))))
        xw = jnp.concatenate(pieces, axis=-1).astype(jnp.bfloat16)   # (N, hp, w_pad, 25*Cin)
        l_in = tm
        x_tiles = xw.reshape(n, nt, l_in, kf)
    else:
        # kw folded only: K = 5*Cin, kh handled in-kernel via whole-row shifts.
        pieces = []
        for kw in range(5):
            p = x_pad[:, :, kw:, :]
            pieces.append(jnp.pad(p, ((0, 0), (0, 0), (0, kw), (0, 0))))
        xw = jnp.concatenate(pieces, axis=-1).astype(jnp.bfloat16)   # (N, hp+4, w_pad, 5*Cin)
        # Overlapping 4-row-halo slabs per row tile (small duplication).
        # TODO(synk): replace this HBM re-materialization with an in-kernel manual DMA of
        # the halo window (memory_space=pl.ANY + make_async_copy) to cut input HBM traffic.
        slabs = jnp.stack([xw[:, t * th: t * th + th + 4] for t in range(nt)], axis=1)
        l_in = (th + 4) * w_pad
        x_tiles = slabs.reshape(n, nt, l_in, kf)

    # ratio in the padded frame; zeros in junk columns / padded rows keep garbage at 0.
    ratio_full = jnp.pad(mask_ratio, ((0, 0), (0, hp - h), (0, w_pad - w)))
    ratio_tiles = ratio_full.reshape(n, nt, tm, 1)

    # ---- combined weight: (n_kh, Kf, cout_p), rows ordered (kw, cin) within each kh ----
    wc = _combine_weights(w3, w5, w1)                    # (Cout, Cin, 5, 5)
    wt = jnp.transpose(wc, (2, 3, 1, 0))                 # (kh, kw, cin, cout)
    w_arr = wt.reshape(n_kh, kf, cout)
    w_arr = jnp.pad(w_arr, ((0, 0), (0, 0), (0, cout_p - cout))).astype(jnp.bfloat16)

    # ---- VMEM budget: actual double-buffered footprint + temporaries, capped at 40 MiB ----
    io_bytes = 2 * (_vmem_tile_bytes(l_in, kf, 2)
                    + _vmem_tile_bytes(tm, 1, 4)
                    + _vmem_tile_bytes(tm, ct, 4))
    w_bytes = 2 * n_kh * _vmem_tile_bytes(kf, ct, 2)
    temp_bytes = 3 * _vmem_tile_bytes(tm, ct, 4)         # chained-dot intermediates headroom
    vmem_limit = int(min(40 << 20, max(16 << 20, io_bytes + w_bytes + temp_bytes + (4 << 20))))

    out_tiles = pl.pallas_call(
        functools.partial(_mapconv_kernel, n_kh, w_pad),
        grid=(n, nt, n_j),                               # cout tiles innermost -> x/ratio stay resident
        in_specs=[
            pl.BlockSpec((None, None, l_in, kf), lambda b, t, j: (b, t, 0, 0)),
            pl.BlockSpec((None, None, tm, 1), lambda b, t, j: (b, t, 0, 0)),
            pl.BlockSpec((n_kh, kf, ct), lambda b, t, j: (0, 0, j)),
        ],
        out_specs=pl.BlockSpec((None, None, tm, ct), lambda b, t, j: (b, t, 0, j)),
        out_shape=jax.ShapeDtypeStruct((n, nt, tm, cout_p), jnp.float32),
        compiler_params=pltpu.CompilerParams(
            dimension_semantics=("parallel", "parallel", "parallel"),
            vmem_limit_bytes=vmem_limit),
    )(x_tiles, ratio_tiles, w_arr)

    # glue: drop junk columns / padded rows / padded cout, back to NCHW
    out_nhwc = out_tiles.reshape(n, hp, w_pad, cout_p)[:, :h, :w, :cout]
    out = jnp.transpose(out_nhwc, (0, 3, 1, 2))
    # PyTorch returns update_mask with Cout (identical) channels -> keep that contract.
    update_mask = jnp.broadcast_to(um_clamped[:, None, :, :], (n, cout, h, w))
    return out, update_mask


# ----------------------------- references for the self-test -----------------------------

def _reference_f32(img, mask, w3, w5, w1):
    """Pure-JAX f32 replica of the PyTorch forward."""
    dn = ("NCHW", "OIHW", "NCHW")
    cout, cin = w3.shape[0], w3.shape[1]
    x = img * mask
    c3 = lax.conv_general_dilated(x, w3, (1, 1), [(1, 1), (1, 1)], dimension_numbers=dn)
    c5 = lax.conv_general_dilated(x, w5, (1, 1), [(2, 2), (2, 2)], dimension_numbers=dn)
    c1 = lax.conv_general_dilated(x, w1, (1, 1), [(0, 0), (0, 0)], dimension_numbers=dn)
    mk = jnp.ones((cout, cin, 3, 3), jnp.float32)
    um = lax.conv_general_dilated(mask, mk, (1, 1), [(1, 1), (1, 1)], dimension_numbers=dn)
    ratio = (cin * 9) / (um + 1e-8)
    umc = jnp.clip(um, 0.0, 1.0)
    out = jnp.maximum((c3 / 3.0 + c5 / 3.0 + c1 / 3.0) * (ratio * umc), 0.0)
    return out, umc


def _reference_bf16(img, mask, w3, w5, w1):
    """Same math as the kernel: bf16 matmul operands, f32 accumulation / elementwise."""
    dn = ("NCHW", "OIHW", "NCHW")
    cout, cin = w3.shape[0], w3.shape[1]
    wc = _combine_weights(w3, w5, w1).astype(jnp.bfloat16)
    x = (img * mask).astype(jnp.bfloat16)
    conved = lax.conv_general_dilated(x, wc, (1, 1), [(2, 2), (2, 2)],
                                      dimension_numbers=dn,
                                      preferred_element_type=jnp.float32)
    mk = jnp.ones((cout, cin, 3, 3), jnp.float32)
    um = lax.conv_general_dilated(mask, mk, (1, 1), [(1, 1), (1, 1)], dimension_numbers=dn)
    ratio = (cin * 9) / (um + 1e-8)
    umc = jnp.clip(um, 0.0, 1.0)
    out = jnp.maximum(conved * (ratio * umc), 0.0)
    return out, umc


if __name__ == "__main__":
    def xavier_uniform(k, shape):
        fan_in = shape[1] * shape[2] * shape[3]
        fan_out = shape[0] * shape[2] * shape[3]
        bound = (6.0 / (fan_in + fan_out)) ** 0.5
        return jax.random.uniform(k, shape, jnp.float32, -bound, bound)

    fn = jax.jit(map_conv_activ, static_argnums=0)

    configs = [
        (2, 4, 8, 16, 16),      # 25*Cin<=128 -> single-dot path, 128-lane cout tile
        (1, 8, 256, 15, 13),    # kw-fold path (5 dots), 256-lane cout tile, padded H / row split
    ]
    key = jax.random.PRNGKey(0)
    for (N, CIN, COUT, H, W) in configs:
        key, k_img, k_mask, kk3, kk5, kk1 = jax.random.split(key, 6)
        img = jax.random.normal(k_img, (N, CIN, H, W), jnp.float32)
        mask = (jax.random.uniform(k_mask, (N, CIN, H, W)) > 0.4).astype(jnp.float32)

        # deterministic synthetic parameters (shapes per PartialMAPConv2d.__init__, bias=False)
        w3 = xavier_uniform(kk3, (COUT, CIN, 3, 3))   # self.weight
        w5 = xavier_uniform(kk5, (COUT, CIN, 5, 5))   # conv_beta.weight
        w1 = xavier_uniform(kk1, (COUT, CIN, 1, 1))   # conv_gamma.weight

        out, update_mask = fn(3, img, mask, w3, w5, w1)
        jax.block_until_ready((out, update_mask))

        assert out.shape == (N, COUT, H, W) and update_mask.shape == (N, COUT, H, W)

        # strict check against a reference using identical bf16 operands / f32 accumulation
        ref_out_m, ref_um = _reference_bf16(img, mask, w3, w5, w1)
        assert jnp.allclose(out, ref_out_m, rtol=1e-3, atol=1e-3), \
            f"output mismatch (bf16-matched ref) for config {(N, CIN, COUT, H, W)}"
        assert jnp.allclose(update_mask, ref_um, rtol=1e-5, atol=1e-5), \
            f"update_mask mismatch for config {(N, CIN, COUT, H, W)}"

        # sanity check against the full-f32 PyTorch-faithful reference (bf16 quantization only)
        ref_out_f, _ = _reference_f32(img, mask, w3, w5, w1)
        rel = jnp.linalg.norm(out - ref_out_f) / (jnp.linalg.norm(ref_out_f) + 1e-12)
        assert rel < 2e-2, f"relative L2 error vs f32 reference too high: {rel}"

    print("KERNEL_OK")
</pallas_src>

<mosaic_0001>
module attributes {stable_mosaic.version = 11 : i64} {
  func.func @_mapconv_kernel(%arg0: i32, %arg1: i32, %arg2: i32, %arg3: memref<1x1x384x100xbf16, #tpu.memory_space<vmem>>, %arg4: memref<1x1x384x1xf32, #tpu.memory_space<vmem>>, %arg5: memref<1x100x128xbf16, #tpu.memory_space<vmem>>, %arg6: memref<1x1x384x128xf32, #tpu.memory_space<vmem>>) attributes {dimension_semantics = [#tpu.dimension_semantics<parallel>, #tpu.dimension_semantics<parallel>, #tpu.dimension_semantics<parallel>], iteration_bounds = array<i64: 2, 1, 1>, scalar_prefetch = 0 : i64, scratch_operands = 0 : i64, tpu.core_type = #tpu.core_type<tc>, window_params = [{transform_indices = @transform_0, window_bounds = array<i64: 1, 1, 384, 100>}, {transform_indices = @transform_1, window_bounds = array<i64: 1, 1, 384, 1>}, {transform_indices = @transform_2, window_bounds = array<i64: 1, 100, 128>}, {transform_indices = @transform_3, window_bounds = array<i64: 1, 1, 384, 128>}]} {
    %c0 = arith.constant 0 : index
    %c0_0 = arith.constant 0 : index
    %c0_1 = arith.constant 0 : index
    %c0_2 = arith.constant 0 : index
    %0 = vector.load %arg3[%c0, %c0_0, %c0_1, %c0_2] : memref<1x1x384x100xbf16, #tpu.memory_space<vmem>>, vector<1x1x384x100xbf16>
    %1 = vector.shape_cast %0 : vector<1x1x384x100xbf16> to vector<384x100xbf16>
    %c0_3 = arith.constant 0 : index
    %c0_4 = arith.constant 0 : index
    %c0_5 = arith.constant 0 : index
    %2 = vector.load %arg5[%c0_3, %c0_4, %c0_5] : memref<1x100x128xbf16, #tpu.memory_space<vmem>>, vector<1x100x128xbf16>
    %3 = vector.shape_cast %2 : vector<1x100x128xbf16> to vector<100x128xbf16>
    %cst = arith.constant dense<0.000000e+00> : vector<384x128xf32>
    %4 = tpu.matmul %1, %3, %cst {dimension_numbers = #tpu.dot_dimension_numbers<[1], [0], [0], [1], [0, 0, 1, 1], [], []>} : vector<384x100xbf16>, vector<100x128xbf16>, vector<384x128xf32> -> vector<384x128xf32>
    %c0_6 = arith.constant 0 : index
    %c0_7 = arith.constant 0 : index
    %c0_8 = arith.constant 0 : index
    %c0_9 = arith.constant 0 : index
    %5 = vector.load %arg4[%c0_6, %c0_7, %c0_8, %c0_9] : memref<1x1x384x1xf32, #tpu.memory_space<vmem>>, vector<1x1x384x1xf32>
    %6 = vector.shape_cast %5 : vector<1x1x384x1xf32> to vector<384x1xf32>
    %7 = vector.broadcast %6 : vector<384x1xf32> to vector<384x128xf32>
    %8 = arith.mulf %4, %7 : vector<384x128xf32>
    %cst_10 = arith.constant 0.000000e+00 : f32
    %9 = vector.broadcast %cst_10 : f32 to vector<384x128xf32>
    %10 = arith.maximumf %8, %9 : vector<384x128xf32>
    %c0_11 = arith.constant 0 : index
    %c0_12 = arith.constant 0 : index
    %c0_13 = arith.constant 0 : index
    %c0_14 = arith.constant 0 : index
    %11 = vector.load %arg6[%c0_11, %c0_12, %c0_13, %c0_14] : memref<1x1x384x128xf32, #tpu.memory_space<vmem>>, vector<1x1x384x128xf32>
    %12 = vector.shape_cast %11 : vector<1x1x384x128xf32> to vector<384x128xf32>
    %13 = vector.shape_cast %10 : vector<384x128xf32> to vector<1x1x384x128xf32>
    tpu.vector_store %arg6[%c0_11, %c0_12, %c0_13, %c0_14], %13 {strides = array<i32>} : memref<1x1x384x128xf32, #tpu.memory_space<vmem>>, vector<1x1x384x128xf32>,
    return
  }
  func.func @transform_0(%arg0: i32, %arg1: i32, %arg2: i32) -> (i32, i32, i32, i32) {
    %c0_i32 = arith.constant 0 : i32
    %c0_i32_0 = arith.constant 0 : i32
    %c0_i32_1 = arith.constant 0 : i32
    return %arg0, %arg1, %c0_i32, %c0_i32_0 : i32, i32, i32, i32
  }
  func.func @transform_1(%arg0: i32, %arg1: i32, %arg2: i32) -> (i32, i32, i32, i32) {
    %c0_i32 = arith.constant 0 : i32
    %c0_i32_0 = arith.constant 0 : i32
    %c0_i32_1 = arith.constant 0 : i32
    return %arg0, %arg1, %c0_i32, %c0_i32_0 : i32, i32, i32, i32
  }
  func.func @transform_2(%arg0: i32, %arg1: i32, %arg2: i32) -> (i32, i32, i32) {
    %c0_i32 = arith.constant 0 : i32
    %c0_i32_0 = arith.constant 0 : i32
    %c0_i32_1 = arith.constant 0 : i32
    return %c0_i32, %c0_i32_0, %arg2 : i32, i32, i32
  }
  func.func @transform_3(%arg0: i32, %arg1: i32, %arg2: i32) -> (i32, i32, i32, i32) {
    %c0_i32 = arith.constant 0 : i32
    %c0_i32_0 = arith.constant 0 : i32
    return %arg0, %arg1, %c0_i32, %arg2 : i32, i32, i32, i32
  }
}

</mosaic_0001>

<bundles_post_ra>
// kernel: map_conv_activ.1
= control target key start
LH: loop header
LB: loop body
LE: loop exit
PB: predicated region body
PF: predicated region fallthrough
CT: control target
= control target key end

     0   :  { %s1650_s12 = smov 0   ;;  %s1652_s13 = smov 0   ;;  %s1958_s0 = inlined_call_operand.vmem [shape: bf16[2,1,384,100], index: 0, kind: input, shape index: {}]   ;;  %s1959_s1 = inlined_call_operand.vmem [shape: f32[2,1,384,1], index: 1, kind: input, shape index: {}]   ;;  %s1960_s2 = inlined_call_operand.vmem [shape: bf16[1,100,128], index: 2, kind: input, shape index: {}]   ;;  %s1961_s3 = inlined_call_operand.vmem [shape: f32[2,1,384,128], index: 3, kind: output, shape index: {}]  }
   0x1   :  { %s1654_s14 = smov 0  }
   0x2 LB: > { %s32_s15 = sadd.s32 1, %s1623_s13  ;;  %p1375_p0 = scmp.ge.s32.totalorder %s1627_s14, 1  ;;  %s1627_s14 = sphi %s1654_s14, %s13_s14   ;;  %s1623_s13 = sphi %s1652_s13, %s1963_s13   ;;  %s1619_s12 = sphi %s1650_s12, %s1962_s12  }
   0x3   : > { %p34_p1 = scmp.ge.s32.totalorder %s32_s15, 2  ;;  %p191_p2 = scmp.lt.s32.totalorder %s1627_s14, 3 }
   0x5   : > { %s1965_s15 = smov (%p34_p1, %s32_s15), 0  ;;  %p192_p3 = pnand %p1375_p0, %p191_p2 }
   0x6   : > { %v1574_v0 = vld [vmem:[%s1960_s2] sm:$0xff] (!%p192_p3)   ;;  %v1629_v1 = vmov (!%p192_p3), 0   ;;  %v1575_v2 = vld [vmem:[%s1960_s2 + $0x8] sm:$0xff] (!%p192_p3)   ;;  %p239_p4 = scmp.lt.s32.totalorder (!%p192_p3), %s1619_s12, 1  ;;  %v1576_v3 = vld [vmem:[%s1960_s2 + $0x10] sm:$0xff] (!%p192_p3)   ;;  %vm494_vm0 = vcmask (!%p192_p3), 818176  }
   0x7   : > { %195 = sbr.rel (%p192_p3) target bundleno = 296 (0x128), region = 32  ;;  %1573 = vset.pattern.permute.xlu1 (!%p192_p3), %v1629_v1  ;;  %1572 = vset.pattern.permute.xlu0 (!%p192_p3), %v1629_v1  ;;  %v1577_v6 = vld [vmem:[%s1960_s2 + $0x18] sm:$0xff] (!%p192_p3)   ;;  %v1578_v9 = vld [vmem:[%s1960_s2 + $0x20] sm:$0xff] (!%p192_p3)   ;;  %v1579_v14 = vld [vmem:[%s1960_s2 + $0x28] sm:$0xff] (!%p192_p3)   ;;  %vm567_vm1 = vcmask (!%p192_p3), 1041408  }
   0x8   : > { %1467 = vmatprep.subr.bf16.mxu0 (!%p192_p3), %v1574_v0  ;;  %1529 = vmatprep.subr.bf16.mxu1 (!%p192_p3), %v1574_v0  ;;  %v1580_v17 = vld [vmem:[%s1960_s2 + $0x30] ss:$0 sps:$4 sm:$0x33] (!%p192_p3)  }
   0x9   : > { %1468 = vmatpush3.bf16.msra.mxu0 (!%p192_p3), %v1574_v0  ;;  %1536 = vmatpush3.bf16.msra.mxu1 (!%p192_p3), %v1574_v0  ;;  %v569_v20 = vsel (!%p192_p3), %vm567_vm1, %v1580_v17, 0 }
   0xa   : > { %1469 = vmatprep.subr.bf16.mxu0 (!%p192_p3), %v1575_v2  ;;  %1530 = vmatprep.subr.bf16.mxu1 (!%p192_p3), %v1575_v2 }
   0xd   : > { %1470 = vmatpush3.bf16.msra.mxu0 (!%p192_p3), %v1575_v2  ;;  %1537 = vmatpush3.bf16.msra.mxu1 (!%p192_p3), %v1575_v2 }
   0xe   : > { %s1967_s12 = smov (!%p239_p4, %s1619_s12), 1  ;;  %1471 = vmatprep.subr.bf16.mxu0 %v1576_v3  ;;  %1531 = vmatprep.subr.bf16.mxu1 %v1576_v3 }
   0xf   : > { %s1546_s22 = smul.u32 384, %s1967_s12 }
  0x10   : > { %s1545_s23 = smul.u32 192, %s1967_s12 }
  0x11   : > { %s1686_s26 = scalar_lea.vmem %s1959_s1, %s1546_s22  ;;  %1472 = vmatpush3.bf16.msra.mxu0 %v1576_v3  ;;  %1538 = vmatpush3.bf16.msra.mxu1 %v1576_v3  ;;  %s1860_s17 = scalar_lea.vmem %s1961_s3, %s1546_s22 }
  0x12   : > { %v798_v4 = vld [vmem:[%s1686_s26 + $0x10] sm:$0xff]  ;;  %v796_v5 = vld [vmem:[%s1686_s26] sm:$0xff]  ;;  %s1696_s4 = scalar_lea.vmem %s1958_s0, %s1545_s23  ;;  %v799_v7 = vld [vmem:[%s1686_s26 + $0x18] sm:$0xff]  ;;  %1473 = vmatprep.subr.bf16.mxu0 %v1577_v6  ;;  %1532 = vmatprep.subr.bf16.mxu1 %v1577_v6 }
  0x13   : > { %856 = vperm.xlu1 %1573, %v798_v4   ;;  %846 = vperm.xlu0 %1572, %v796_v5   ;;  %v797_v8 = vld [vmem:[%s1686_s26 + $0x8] sm:$0xff]  ;;  %v1581_v11 = vld [vmem:[%s1696_s4] sm:$0xff]   ;;  %v803_v15 = vld [vmem:[%s1686_s26 + $0x38] sm:$0xff] }
  0x14   : > { %v801_v10 = vld [vmem:[%s1686_s26 + $0x28] sm:$0xff]  ;;  %v800_v12 = vld [vmem:[%s1686_s26 + $0x20] sm:$0xff]  ;;  %1481 = vmatprep.mubr.msk.bf16.mxu0 %vm494_vm0, %v1581_v11  ;;  %v802_v16 = vld [vmem:[%s1686_s26 + $0x30] sm:$0xff] }
  0x15   : > { %v1582_v13 = vld [vmem:[%s1696_s4 + $0x60] sm:$0xff]   ;;  %1474 = vmatpush3.bf16.msra.mxu0 %v1577_v6  ;;  %1539 = vmatpush3.bf16.msra.mxu1 %v1577_v6  ;;  %v805_v18 = vld [vmem:[%s1686_s26 + $0x48] sm:$0xff]  ;;  %v807_v21 = vld [vmem:[%s1686_s26 + $0x58] sm:$0xff] }
  0x16   : > { %1475 = vmatprep.subr.bf16.mxu0 %v1578_v9  ;;  %1533 = vmatprep.subr.bf16.mxu1 %v1578_v9  ;;  %v804_v19 = vld [vmem:[%s1686_s26 + $0x40] sm:$0xff]  ;;  %v806_v22 = vld [vmem:[%s1686_s26 + $0x50] sm:$0xff]  ;;  %v1583_v23 = vld [vmem:[%s1696_s4 + $0x8] sm:$0xff]  }
  0x17   : > { %861 = vperm.xlu1 %1573, %v799_v7   ;;  %851 = vperm.xlu0 %1572, %v797_v8   ;;  %v1584_v24 = vld [vmem:[%s1696_s4 + $0x68] sm:$0xff]   ;;  %v1585_v25 = vld [vmem:[%s1696_s4 + $0x10] sm:$0xff]   ;;  %v808_v28 = vld [vmem:[%s1686_s26 + $0x60] sm:$0xff] }
  0x18   : > { %1505 = vmatprep.mubr.msk.bf16.mxu1 %vm494_vm0, %v1582_v13  ;;  %v1586_v26 = vld [vmem:[%s1696_s4 + $0x70] sm:$0xff]   ;;  %v809_v27 = vld [vmem:[%s1686_s26 + $0x68] sm:$0xff]  ;;  %v811_v29 = vld [vmem:[%s1686_s26 + $0x78] sm:$0xff] }
  0x19   : > { %1476 = vmatpush3.bf16.msra.mxu0 %v1578_v9  ;;  %1540 = vmatpush3.bf16.msra.mxu1 %v1578_v9  ;;  %v810_v30 = vld [vmem:[%s1686_s26 + $0x70] sm:$0xff]  ;;  %v1587_v31 = vld [vmem:[%s1696_s4 + $0x18] sm:$0xff]   ;;  %v1589_v33 = vld [vmem:[%s1696_s4 + $0x20] sm:$0xff]  }
  0x1a   : > { %1477 = vmatprep.subr.bf16.mxu0 %v1579_v14  ;;  %1534 = vmatprep.subr.bf16.mxu1 %v1579_v14  ;;  %v1588_v32 = vld [vmem:[%s1696_s4 + $0x78] sm:$0xff]   ;;  %v1590_v34 = vld [vmem:[%s1696_s4 + $0x80] sm:$0xff]   ;;  %v813_v35 = vld [vmem:[%s1686_s26 + $0x88] sm:$0xff] }
  0x1b   : > { %871 = vperm.xlu1 %1573, %v801_v10   ;;  %866 = vperm.xlu0 %1572, %v800_v12   ;;  %v812_v36 = vld [vmem:[%s1686_s26 + $0x80] sm:$0xff]  ;;  %v815_v37 = vld [vmem:[%s1686_s26 + $0x98] sm:$0xff]  ;;  %v814_v38 = vld [vmem:[%s1686_s26 + $0x90] sm:$0xff] }
  0x1c   : > { %v1591_v39 = vld [vmem:[%s1696_s4 + $0x28] sm:$0xff]   ;;  %v1593_v41 = vld [vmem:[%s1696_s4 + $0x30] sm:$0xff]   ;;  %v816_v44 = vld [vmem:[%s1686_s26 + $0xa0] sm:$0xff] }
  0x1d   : > { %1478 = vmatpush3.bf16.msra.mxu0 %v1579_v14  ;;  %1541 = vmatpush3.bf16.msra.mxu1 %v1579_v14  ;;  %v1592_v40 = vld [vmem:[%s1696_s4 + $0x88] sm:$0xff]   ;;  %v1594_v42 = vld [vmem:[%s1696_s4 + $0x90] sm:$0xff]   ;;  %v819_v45 = vld [vmem:[%s1686_s26 + $0xb8] sm:$0xff] }
  0x1e   : > { %1543 = vmatprep.subr.msk.bf16.mxu0 %vm567_vm1, %v1580_v17  ;;  %1544 = vmatprep.subr.msk.bf16.mxu1 %vm567_vm1, %v1580_v17  ;;  %v817_v43 = vld [vmem:[%s1686_s26 + $0xa8] sm:$0xff]  ;;  %v818_v46 = vld [vmem:[%s1686_s26 + $0xb0] sm:$0xff]  ;;  %v1595_v47 = vld [vmem:[%s1696_s4 + $0x38] sm:$0xff]  }
  0x1f   : > { %881 = vperm.xlu1 %1573, %v803_v15   ;;  %876 = vperm.xlu0 %1572, %v802_v16   ;;  %v1596_v48 = vld [vmem:[%s1696_s4 + $0x98] sm:$0xff]   ;;  %v1597_v49 = vld [vmem:[%s1696_s4 + $0x40] sm:$0xff]   ;;  %v821_v51 = vld [vmem:[%s1686_s26 + $0xc8] sm:$0xff] }
  0x20   : > { %v1598_v50 = vld [vmem:[%s1696_s4 + $0xa0] sm:$0xff]   ;;  %v823_v53 = vld [vmem:[%s1686_s26 + $0xd8] sm:$0xff]  ;;  %v822_v54 = vld [vmem:[%s1686_s26 + $0xd0] sm:$0xff] }
  0x21   : > { %1480 = vmatpush3.bf16.msra.mxu0 %v569_v20  ;;  %1542 = vmatpush3.bf16.msra.mxu1 %v569_v20  ;;  %v820_v52 = vld [vmem:[%s1686_s26 + $0xc0] sm:$0xff]  ;;  %v1599_v55 = vld [vmem:[%s1696_s4 + $0x48] sm:$0xff]   ;;  %v1601_v57 = vld [vmem:[%s1696_s4 + $0x50] sm:$0xff]  }
  0x22   : > { %v1600_v56 = vld [vmem:[%s1696_s4 + $0xa8] sm:$0xff]   ;;  %v1602_v58 = vld [vmem:[%s1696_s4 + $0xb0] sm:$0xff]   ;;  %v824_v60 = vld [vmem:[%s1686_s26 + $0xe0] sm:$0xff] }
  0x23   : > { %891 = vperm.xlu1 %1573, %v805_v18   ;;  %886 = vperm.xlu0 %1572, %v804_v19   ;;  %v825_v59 = vld [vmem:[%s1686_s26 + $0xe8] sm:$0xff]  ;;  %v827_v61 = vld [vmem:[%s1686_s26 + $0xf8] sm:$0xff]  ;;  %v826_v62 = vld [vmem:[%s1686_s26 + $0xf0] sm:$0xff] }
  0x24   : > { %1482 = vmatmul.mubr.msk.bf16.vlgmr.msra.gmra.mrb[0].mxu0 %vm494_vm0, %v1583_v23  ;;  %1506 = vmatmul.mubr.msk.bf16.vlgmr.msra.gmra.mrb[0].mxu1 %vm494_vm0, %v1584_v24  ;;  %v1603_v63 = vld [vmem:[%s1696_s4 + $0x58] sm:$0xff]   ;;  %v829_v1 = vld [vmem:[%s1686_s26 + $0x108] sm:$0xff]  ;;  %v828_v2 = vld [vmem:[%s1686_s26 + $0x100] sm:$0xff] }
  0x25   : > { %1485 = vmatprep.mubr.msk.bf16.mxu0 %vm494_vm0, %v1585_v25  ;;  %1509 = vmatprep.mubr.msk.bf16.mxu1 %vm494_vm0, %v1586_v26  ;;  %v1604_v0 = vld [vmem:[%s1696_s4 + $0xb8] sm:$0xff]   ;;  %v830_v4 = vld [vmem:[%s1686_s26 + $0x110] sm:$0xff]  ;;  %v833_v5 = vld [vmem:[%s1686_s26 + $0x128] sm:$0xff] }
  0x26   : > { %v831_v3 = vld [vmem:[%s1686_s26 + $0x118] sm:$0xff]  ;;  %v832_v6 = vld [vmem:[%s1686_s26 + $0x120] sm:$0xff]  ;;  %v834_v8 = vld [vmem:[%s1686_s26 + $0x130] sm:$0xff] }
  0x27   : > { %901 = vperm.xlu1 %1573, %v807_v21   ;;  %896 = vperm.xlu0 %1572, %v806_v22   ;;  %v835_v7 = vld [vmem:[%s1686_s26 + $0x138] sm:$0xff]  ;;  %v837_v9 = vld [vmem:[%s1686_s26 + $0x148] sm:$0xff]  ;;  %v836_v10 = vld [vmem:[%s1686_s26 + $0x140] sm:$0xff] }
  0x28   : > { %v839_v11 = vld [vmem:[%s1686_s26 + $0x158] sm:$0xff]  ;;  %v838_v12 = vld [vmem:[%s1686_s26 + $0x150] sm:$0xff]  ;;  %v841_v13 = vld [vmem:[%s1686_s26 + $0x168] sm:$0xff] }
  0x29   : > { %v840_v14 = vld [vmem:[%s1686_s26 + $0x160] sm:$0xff]  ;;  %v843_v15 = vld [vmem:[%s1686_s26 + $0x178] sm:$0xff]  ;;  %v842_v16 = vld [vmem:[%s1686_s26 + $0x170] sm:$0xff] }
  0x2b   : > { %911 = vperm.xlu1 %1573, %v809_v27   ;;  %906 = vperm.xlu0 %1572, %v808_v28  }
  0x2c   : > { %1486 = vmatmul.mubr.msk.bf16.gmra.mrb[4].mxu0 %vm494_vm0, %v1587_v31  ;;  %1510 = vmatmul.mubr.msk.bf16.gmra.mrb[4].mxu1 %vm494_vm0, %v1588_v32 }
  0x2d   : > { %1489 = vmatprep.mubr.msk.bf16.mxu0 %vm494_vm0, %v1589_v33  ;;  %1513 = vmatprep.mubr.msk.bf16.mxu1 %vm494_vm0, %v1590_v34 }
  0x2f   : > { %921 = vperm.xlu1 %1573, %v811_v29   ;;  %916 = vperm.xlu0 %1572, %v810_v30  }
  0x33   : > { %931 = vperm.xlu1 %1573, %v813_v35   ;;  %926 = vperm.xlu0 %1572, %v812_v36  }
  0x34   : > { %1490 = vmatmul.mubr.msk.bf16.gmra.mrb[8].mxu0 %vm494_vm0, %v1591_v39  ;;  %1514 = vmatmul.mubr.msk.bf16.gmra.mrb[8].mxu1 %vm494_vm0, %v1592_v40 }
  0x35   : > { %1493 = vmatprep.mubr.msk.bf16.mxu0 %vm494_vm0, %v1593_v41  ;;  %1517 = vmatprep.mubr.msk.bf16.mxu1 %vm494_vm0, %v1594_v42 }
  0x37   : > { %941 = vperm.xlu1 %1573, %v815_v37   ;;  %936 = vperm.xlu0 %1572, %v814_v38  }
  0x3b   : > { %951 = vperm.xlu1 %1573, %v817_v43   ;;  %946 = vperm.xlu0 %1572, %v816_v44  }
  0x3c   : > { %1494 = vmatmul.mubr.msk.bf16.gmra.mrb[12].mxu0 %vm494_vm0, %v1595_v47  ;;  %1518 = vmatmul.mubr.msk.bf16.gmra.mrb[12].mxu1 %vm494_vm0, %v1596_v48 }
  0x3d   : > { %1497 = vmatprep.mubr.msk.bf16.mxu0 %vm494_vm0, %v1597_v49  ;;  %1521 = vmatprep.mubr.msk.bf16.mxu1 %vm494_vm0, %v1598_v50 }
  0x3f   : > { %961 = vperm.xlu1 %1573, %v819_v45   ;;  %956 = vperm.xlu0 %1572, %v818_v46  }
  0x43   : > { %971 = vperm.xlu1 %1573, %v821_v51   ;;  %966 = vperm.xlu0 %1572, %v820_v52  }
  0x44   : > { %1498 = vmatmul.mubr.msk.bf16.gmra.mrb[16].mxu0 %vm494_vm0, %v1599_v55  ;;  %1522 = vmatmul.mubr.msk.bf16.gmra.mrb[16].mxu1 %vm494_vm0, %v1600_v56 }
  0x45   : > { %1501 = vmatprep.mubr.msk.bf16.mxu0 %vm494_vm0, %v1601_v57  ;;  %1525 = vmatprep.mubr.msk.bf16.mxu1 %vm494_vm0, %v1602_v58 }
  0x47   : > { %981 = vperm.xlu1 %1573, %v823_v53   ;;  %976 = vperm.xlu0 %1572, %v822_v54  }
  0x4b   : > { %991 = vperm.xlu1 %1573, %v825_v59   ;;  %986 = vperm.xlu0 %1572, %v824_v60  }
  0x4c   : > { %1502 = vmatmul.mubr.msk.bf16.gmra.mrb[20].mxu0 %vm494_vm0, %v1603_v63  ;;  %1526 = vmatmul.mubr.msk.bf16.gmra.mrb[20].mxu1 %vm494_vm0, %v1604_v0 }
  0x4f   : > { %1001 = vperm.xlu1 %1573, %v827_v61   ;;  %996 = vperm.xlu0 %1572, %v826_v62  }
  0x53   : > { %1011 = vperm.xlu1 %1573, %v829_v1   ;;  %1006 = vperm.xlu0 %1572, %v828_v2  }
  0x57   : > { %1021 = vperm.xlu1 %1573, %v831_v3   ;;  %1016 = vperm.xlu0 %1572, %v830_v4  }
  0x5b   : > { %1031 = vperm.xlu1 %1573, %v833_v5   ;;  %1026 = vperm.xlu0 %1572, %v832_v6  }
  0x5f   : > { %1041 = vperm.xlu1 %1573, %v835_v7   ;;  %1036 = vperm.xlu0 %1572, %v834_v8  }
  0x63   : > { %1051 = vperm.xlu1 %1573, %v837_v9   ;;  %1046 = vperm.xlu0 %1572, %v836_v10  }
  0x67   : > { %1061 = vperm.xlu1 %1573, %v839_v11   ;;  %1056 = vperm.xlu0 %1572, %v838_v12  }
  0x6b   : > { %1071 = vperm.xlu1 %1573, %v841_v13   ;;  %1066 = vperm.xlu0 %1572, %v840_v14  }
  0x6f   : > { %1081 = vperm.xlu1 %1573, %v843_v15   ;;  %1076 = vperm.xlu0 %1572, %v842_v16  }
  0x92   : > { %v857_v17 = vpop.permute.xlu1 %856  ;;  %v847_v18 = vpop.permute.xlu0 %846 }
  0x96   : > { %v862_v19 = vpop.permute.xlu1 %861  ;;  %v852_v20 = vpop.permute.xlu0 %851 }
  0x9a   : > { %v1801_v21 = vpop.permute.xlu1 %871  ;;  %v1803_v22 = vpop.permute.xlu0 %866 }
  0x9e   : > { %v1805_v23 = vpop.permute.xlu1 %881  ;;  %v1807_v24 = vpop.permute.xlu0 %876 }
  0xa2   : > { %v1809_v25 = vpop.permute.xlu1 %891  ;;  %v1811_v26 = vpop.permute.xlu0 %886 }
  0xa6   : > { %v1813_v27 = vpop.permute.xlu1 %901  ;;  %v1815_v28 = vpop.permute.xlu0 %896 }
  0xaa   : > { %v1817_v29 = vpop.permute.xlu1 %911  ;;  %v1819_v30 = vpop.permute.xlu0 %906 }
  0xae   : > { %v1821_v31 = vpop.permute.xlu1 %921  ;;  %v1823_v32 = vpop.permute.xlu0 %916 }
  0xb2   : > { %v1825_v33 = vpop.permute.xlu1 %931  ;;  %v1827_v34 = vpop.permute.xlu0 %926 }
  0xb6   : > { %v1829_v35 = vpop.permute.xlu1 %941  ;;  %v1831_v36 = vpop.permute.xlu0 %936 }
  0xba   : > { %v1833_v37 = vpop.permute.xlu1 %951  ;;  %v1835_v38 = vpop.permute.xlu0 %946 }
  0xbe   : > { %v1837_v39 = vpop.permute.xlu1 %961  ;;  %v1839_v40 = vpop.permute.xlu0 %956 }
  0xc2   : > { %v972_v41 = vpop.permute.xlu1 %971  ;;  %v967_v42 = vpop.permute.xlu0 %966 }
  0xc6   : > { %v982_v43 = vpop.permute.xlu1 %981  ;;  %v977_v44 = vpop.permute.xlu0 %976 }
  0xca   : > { %v1841_v45 = vpop.permute.xlu1 %991  ;;  %v987_v46 = vpop.permute.xlu0 %986 }
  0xce   : > { %v1002_v47 = vpop.permute.xlu1 %1001  ;;  %v997_v48 = vpop.permute.xlu0 %996 }
  0xd2   : > { %v1843_v49 = vpop.permute.xlu1 %1011  ;;  %v1845_v50 = vpop.permute.xlu0 %1006 }
  0xd6   : > { %v1847_v51 = vpop.permute.xlu1 %1021  ;;  %v1849_v52 = vpop.permute.xlu0 %1016 }
  0xda   : > { %v1851_v53 = vpop.permute.xlu1 %1031  ;;  %v1853_v54 = vpop.permute.xlu0 %1026 }
  0xde   : > { %v1866_v15 = vpop.permute.xlu1 %1041  ;;  %v1868_v16 = vpop.permute.xlu0 %1036 }
  0xf7   : > { %v1483_v55 = vpop.f32.mrb[0].mxu0  ;;  %v1507_v56 = vpop.f32.mrb[0].mxu1 }
  0xf8   : > { %v1086_v57 = vmul.f32 %v1483_v55, %v857_v17  ;;  %v1110_v58 = vmul.f32 %v1507_v56, %v977_v44  ;;  %v605_v59 = vpop.f32.mrb[1].mxu0  ;;  %v701_v60 = vpop.f32.mrb[1].mxu1 }
  0xf9   : > { %v1084_v61 = vmul.f32 %v847_v18, %v605_v59  ;;  %v1108_v62 = vmul.f32 %v967_v42, %v701_v60  ;;  %v1484_v63 = vpop.f32.mrb[2].mxu0  ;;  %v1508_v0 = vpop.f32.mrb[2].mxu1 }
  0xfa   : > { %v1134_v1 = vmax.f32 %v1086_v57, 0.0  ;;  %v1158_v2 = vmax.f32 %v1110_v58, 0.0  ;;  %v1087_v3 = vmul.f32 %v1484_v63, %v862_v19  ;;  %v1111_v4 = vmul.f32 %v1508_v0, %v982_v43  ;;  %v608_v5 = vpop.f32.mrb[3].mxu0  ;;  %v704_v6 = vpop.f32.mrb[3].mxu1 }
  0xfb   : > { %v1132_v7 = vmax.f32 %v1084_v61, 0.0  ;;  %v1156_v8 = vmax.f32 %v1108_v62, 0.0  ;;  %v1085_v9 = vmul.f32 %v852_v20, %v608_v5  ;;  %v1109_v10 = vmul.f32 %v972_v41, %v704_v6 }
  0xfc   : > { %1182 = vst [vmem:[%s1860_s17 + $0x10] sm:$0xff] %v1134_v1  ;;  %1206 = vst [vmem:[%s1860_s17 + $0xd0] sm:$0xff] %v1158_v2  ;;  %v1135_v11 = vmax.f32 %v1087_v3, 0.0  ;;  %v1159_v12 = vmax.f32 %v1111_v4, 0.0  ;;  %v1883_v1 = vpop.permute.xlu1 %1051  ;;  %v1885_v2 = vpop.permute.xlu0 %1046 }
  0xfd   : > { %1180 = vst [vmem:[%s1860_s17] sm:$0xff] %v1132_v7  ;;  %1204 = vst [vmem:[%s1860_s17 + $0xc0] sm:$0xff] %v1156_v8  ;;  %v1133_v13 = vmax.f32 %v1085_v9, 0.0  ;;  %v1157_v14 = vmax.f32 %v1109_v10, 0.0 }
  0xfe   : > { %1183 = vst [vmem:[%s1860_s17 + $0x18] sm:$0xff] %v1135_v11  ;;  %1207 = vst [vmem:[%s1860_s17 + $0xd8] sm:$0xff] %v1159_v12 }
  0xff   : > { %1181 = vst [vmem:[%s1860_s17 + $0x8] sm:$0xff] %v1133_v13  ;;  %1205 = vst [vmem:[%s1860_s17 + $0xc8] sm:$0xff] %v1157_v14  ;;  %v1487_v17 = vpop.f32.mrb[4].mxu0  ;;  %v1511_v18 = vpop.f32.mrb[4].mxu1 }
 0x100   : > { %v1090_v19 = vmul.f32 %v1487_v17, %v1807_v24  ;;  %v1114_v20 = vmul.f32 %v1511_v18, %v997_v48  ;;  %v621_v41 = vpop.f32.mrb[5].mxu0  ;;  %v717_v42 = vpop.f32.mrb[5].mxu1 }
 0x101   : > { %v1088_v43 = vmul.f32 %v1803_v22, %v621_v41  ;;  %v1112_v44 = vmul.f32 %v987_v46, %v717_v42  ;;  %v1488_v55 = vpop.f32.mrb[6].mxu0  ;;  %v1512_v56 = vpop.f32.mrb[6].mxu1 }
 0x102   : > { %v1138_v57 = vmax.f32 %v1090_v19, 0.0  ;;  %v1162_v58 = vmax.f32 %v1114_v20, 0.0  ;;  %v1091_v59 = vmul.f32 %v1488_v55, %v1805_v23  ;;  %v1115_v60 = vmul.f32 %v1512_v56, %v1002_v47  ;;  %v624_v61 = vpop.f32.mrb[7].mxu0  ;;  %v720_v24 = vpop.f32.mrb[7].mxu1 }
 0x103   : > { %v1136_v48 = vmax.f32 %v1088_v43, 0.0  ;;  %v1160_v62 = vmax.f32 %v1112_v44, 0.0  ;;  %v1089_v22 = vmul.f32 %v1801_v21, %v624_v61  ;;  %v1113_v46 = vmul.f32 %v1841_v45, %v720_v24  ;;  %v1062_v41 = vpop.permute.xlu1 %1061  ;;  %v1057_v42 = vpop.permute.xlu0 %1056 }
 0x104   : > { %1186 = vst [vmem:[%s1860_s17 + $0x30] sm:$0xff] %v1138_v57  ;;  %1210 = vst [vmem:[%s1860_s17 + $0xf0] sm:$0xff] %v1162_v58  ;;  %v1139_v63 = vmax.f32 %v1091_v59, 0.0  ;;  %v1163_v0 = vmax.f32 %v1115_v60, 0.0 }
 0x105   : > { %1184 = vst [vmem:[%s1860_s17 + $0x20] sm:$0xff] %v1136_v48  ;;  %1208 = vst [vmem:[%s1860_s17 + $0xe0] sm:$0xff] %v1160_v62  ;;  %v1137_v23 = vmax.f32 %v1089_v22, 0.0  ;;  %v1161_v47 = vmax.f32 %v1113_v46, 0.0 }
 0x106   : > { %1187 = vst [vmem:[%s1860_s17 + $0x38] sm:$0xff] %v1139_v63  ;;  %1211 = vst [vmem:[%s1860_s17 + $0xf8] sm:$0xff] %v1163_v0 }
 0x107   : > { %1185 = vst [vmem:[%s1860_s17 + $0x28] sm:$0xff] %v1137_v23  ;;  %1209 = vst [vmem:[%s1860_s17 + $0xe8] sm:$0xff] %v1161_v47  ;;  %v1491_v3 = vpop.f32.mrb[8].mxu0  ;;  %v1515_v21 = vpop.f32.mrb[8].mxu1 }
 0x108   : > { %v1094_v45 = vmul.f32 %v1491_v3, %v1815_v28  ;;  %v1118_v4 = vmul.f32 %v1515_v21, %v1849_v52  ;;  %v637_v5 = vpop.f32.mrb[9].mxu0  ;;  %v733_v6 = vpop.f32.mrb[9].mxu1 }
 0x109   : > { %v1092_v7 = vmul.f32 %v1811_v26, %v637_v5  ;;  %v1116_v8 = vmul.f32 %v1845_v50, %v733_v6  ;;  %v1492_v9 = vpop.f32.mrb[10].mxu0  ;;  %v1516_v10 = vpop.f32.mrb[10].mxu1 }
 0x10a   : > { %v1142_v11 = vmax.f32 %v1094_v45, 0.0  ;;  %v1166_v12 = vmax.f32 %v1118_v4, 0.0  ;;  %v1095_v13 = vmul.f32 %v1492_v9, %v1813_v27  ;;  %v1119_v28 = vmul.f32 %v1516_v10, %v1847_v51  ;;  %v640_v14 = vpop.f32.mrb[11].mxu0  ;;  %v736_v52 = vpop.f32.mrb[11].mxu1 }
 0x10b   : > { %v1140_v17 = vmax.f32 %v1092_v7, 0.0  ;;  %v1164_v18 = vmax.f32 %v1116_v8, 0.0  ;;  %v1093_v26 = vmul.f32 %v1809_v25, %v640_v14  ;;  %v1117_v50 = vmul.f32 %v1843_v49, %v736_v52  ;;  %v1072_v23 = vpop.permute.xlu1 %1071  ;;  %v1067_v47 = vpop.permute.xlu0 %1066 }
 0x10c   : > { %1190 = vst [vmem:[%s1860_s17 + $0x50] sm:$0xff] %v1142_v11  ;;  %1214 = vst [vmem:[%s1860_s17 + $0x110] sm:$0xff] %v1166_v12  ;;  %v1143_v19 = vmax.f32 %v1095_v13, 0.0  ;;  %v1167_v20 = vmax.f32 %v1119_v28, 0.0 }
 0x10d   : > { %1188 = vst [vmem:[%s1860_s17 + $0x40] sm:$0xff] %v1140_v17  ;;  %1212 = vst [vmem:[%s1860_s17 + $0x100] sm:$0xff] %v1164_v18  ;;  %v1141_v27 = vmax.f32 %v1093_v26, 0.0  ;;  %v1165_v51 = vmax.f32 %v1117_v50, 0.0 }
 0x10e   : > { %1191 = vst [vmem:[%s1860_s17 + $0x58] sm:$0xff] %v1143_v19  ;;  %1215 = vst [vmem:[%s1860_s17 + $0x118] sm:$0xff] %v1167_v20 }
 0x10f   : > { %1189 = vst [vmem:[%s1860_s17 + $0x48] sm:$0xff] %v1141_v27  ;;  %1213 = vst [vmem:[%s1860_s17 + $0x108] sm:$0xff] %v1165_v51  ;;  %v1495_v43 = vpop.f32.mrb[12].mxu0  ;;  %v1519_v44 = vpop.f32.mrb[12].mxu1 }
 0x110   : > { %v1098_v25 = vmul.f32 %v1495_v43, %v1823_v32  ;;  %v1122_v49 = vmul.f32 %v1519_v44, %v1868_v16  ;;  %v653_v55 = vpop.f32.mrb[13].mxu0  ;;  %v749_v56 = vpop.f32.mrb[13].mxu1 }
 0x111   : > { %v1096_v57 = vmul.f32 %v1819_v30, %v653_v55  ;;  %v1120_v58 = vmul.f32 %v1853_v54, %v749_v56  ;;  %v1496_v59 = vpop.f32.mrb[14].mxu0  ;;  %v1520_v60 = vpop.f32.mrb[14].mxu1 }
 0x112   : > { %v1146_v61 = vmax.f32 %v1098_v25, 0.0  ;;  %v1170_v24 = vmax.f32 %v1122_v49, 0.0  ;;  %v1099_v48 = vmul.f32 %v1496_v59, %v1821_v31  ;;  %v1123_v32 = vmul.f32 %v1520_v60, %v1866_v15  ;;  %v656_v62 = vpop.f32.mrb[15].mxu0  ;;  %v752_v16 = vpop.f32.mrb[15].mxu1 }
 0x113   : > { %v1144_v22 = vmax.f32 %v1096_v57, 0.0  ;;  %v1168_v46 = vmax.f32 %v1120_v58, 0.0  ;;  %v1097_v30 = vmul.f32 %v1817_v29, %v656_v62  ;;  %v1121_v54 = vmul.f32 %v1851_v53, %v752_v16  ;;  %v1082_v26 = vpop.permute.xlu1 %1081  ;;  %v1077_v50 = vpop.permute.xlu0 %1076 }
 0x114   : > { %1194 = vst [vmem:[%s1860_s17 + $0x70] sm:$0xff] %v1146_v61  ;;  %1218 = vst [vmem:[%s1860_s17 + $0x130] sm:$0xff] %v1170_v24  ;;  %v1147_v63 = vmax.f32 %v1099_v48, 0.0  ;;  %v1171_v0 = vmax.f32 %v1123_v32, 0.0 }
 0x115   : > { %1192 = vst [vmem:[%s1860_s17 + $0x60] sm:$0xff] %v1144_v22  ;;  %1216 = vst [vmem:[%s1860_s17 + $0x120] sm:$0xff] %v1168_v46  ;;  %v1145_v31 = vmax.f32 %v1097_v30, 0.0  ;;  %v1169_v15 = vmax.f32 %v1121_v54, 0.0 }
 0x116   : > { %1195 = vst [vmem:[%s1860_s17 + $0x78] sm:$0xff] %v1147_v63  ;;  %1219 = vst [vmem:[%s1860_s17 + $0x138] sm:$0xff] %v1171_v0 }
 0x117   : > { %1193 = vst [vmem:[%s1860_s17 + $0x68] sm:$0xff] %v1145_v31  ;;  %1217 = vst [vmem:[%s1860_s17 + $0x128] sm:$0xff] %v1169_v15  ;;  %v1499_v3 = vpop.f32.mrb[16].mxu0  ;;  %v1523_v21 = vpop.f32.mrb[16].mxu1 }
 0x118   : > { %v1102_v29 = vmul.f32 %v1499_v3, %v1831_v36  ;;  %v1126_v45 = vmul.f32 %v1523_v21, %v1057_v42  ;;  %v669_v53 = vpop.f32.mrb[17].mxu0  ;;  %v765_v4 = vpop.f32.mrb[17].mxu1 }
 0x119   : > { %v1100_v5 = vmul.f32 %v1827_v34, %v669_v53  ;;  %v1124_v6 = vmul.f32 %v1885_v2, %v765_v4  ;;  %v1500_v7 = vpop.f32.mrb[18].mxu0  ;;  %v1524_v8 = vpop.f32.mrb[18].mxu1 }
 0x11a   : > { %v1150_v9 = vmax.f32 %v1102_v29, 0.0  ;;  %v1174_v10 = vmax.f32 %v1126_v45, 0.0  ;;  %v1103_v11 = vmul.f32 %v1500_v7, %v1829_v35  ;;  %v1127_v12 = vmul.f32 %v1524_v8, %v1062_v41  ;;  %v672_v13 = vpop.f32.mrb[19].mxu0  ;;  %v768_v36 = vpop.f32.mrb[19].mxu1 }
 0x11b   : > { %v1148_v28 = vmax.f32 %v1100_v5, 0.0  ;;  %v1172_v14 = vmax.f32 %v1124_v6, 0.0  ;;  %v1101_v34 = vmul.f32 %v1825_v33, %v672_v13  ;;  %v1125_v2 = vmul.f32 %v1883_v1, %v768_v36 }
 0x11c   : > { %1198 = vst [vmem:[%s1860_s17 + $0x90] sm:$0xff] %v1150_v9  ;;  %1222 = vst [vmem:[%s1860_s17 + $0x150] sm:$0xff] %v1174_v10  ;;  %v1151_v52 = vmax.f32 %v1103_v11, 0.0  ;;  %v1175_v17 = vmax.f32 %v1127_v12, 0.0 }
 0x11d   : > { %1196 = vst [vmem:[%s1860_s17 + $0x80] sm:$0xff] %v1148_v28  ;;  %1220 = vst [vmem:[%s1860_s17 + $0x140] sm:$0xff] %v1172_v14  ;;  %v1149_v35 = vmax.f32 %v1101_v34, 0.0  ;;  %v1173_v18 = vmax.f32 %v1125_v2, 0.0 }
 0x11e   : > { %1199 = vst [vmem:[%s1860_s17 + $0x98] sm:$0xff] %v1151_v52  ;;  %1223 = vst [vmem:[%s1860_s17 + $0x158] sm:$0xff] %v1175_v17 }
 0x11f   : > { %1197 = vst [vmem:[%s1860_s17 + $0x88] sm:$0xff] %v1149_v35  ;;  %1221 = vst [vmem:[%s1860_s17 + $0x148] sm:$0xff] %v1173_v18  ;;  %v1503_v19 = vpop.f32.mrb[20].mxu0  ;;  %v1527_v20 = vpop.f32.mrb[20].mxu1 }
 0x120   : > { %v1106_v33 = vmul.f32 %v1503_v19, %v1839_v40  ;;  %v1130_v27 = vmul.f32 %v1527_v20, %v1077_v50  ;;  %v685_v1 = vpop.f32.mrb[21].mxu0  ;;  %v781_v51 = vpop.f32.mrb[21].mxu1 }
 0x121   : > { %v1104_v41 = vmul.f32 %v1835_v38, %v685_v1  ;;  %v1128_v42 = vmul.f32 %v1067_v47, %v781_v51  ;;  %v1504_v43 = vpop.f32.mrb[22].mxu0  ;;  %v1528_v44 = vpop.f32.mrb[22].mxu1 }
 0x122   : > { %v1154_v25 = vmax.f32 %v1106_v33, 0.0  ;;  %v1178_v49 = vmax.f32 %v1130_v27, 0.0  ;;  %v1107_v55 = vmul.f32 %v1504_v43, %v1837_v39  ;;  %v1131_v56 = vmul.f32 %v1528_v44, %v1082_v26  ;;  %v688_v40 = vpop.f32.mrb[23].mxu0  ;;  %v784_v57 = vpop.f32.mrb[23].mxu1 }
 0x123   : > { %v1152_v58 = vmax.f32 %v1104_v41, 0.0  ;;  %v1176_v59 = vmax.f32 %v1128_v42, 0.0  ;;  %v1105_v38 = vmul.f32 %v1833_v37, %v688_v40  ;;  %v1129_v60 = vmul.f32 %v1072_v23, %v784_v57 }
 0x124   : > { %1202 = vst [vmem:[%s1860_s17 + $0xb0] sm:$0xff] %v1154_v25  ;;  %1226 = vst [vmem:[%s1860_s17 + $0x170] sm:$0xff] %v1178_v49  ;;  %v1155_v61 = vmax.f32 %v1107_v55, 0.0  ;;  %v1179_v24 = vmax.f32 %v1131_v56, 0.0 }
 0x125   : > { %1200 = vst [vmem:[%s1860_s17 + $0xa0] sm:$0xff] %v1152_v58  ;;  %1224 = vst [vmem:[%s1860_s17 + $0x160] sm:$0xff] %v1176_v59  ;;  %v1153_v48 = vmax.f32 %v1105_v38, 0.0  ;;  %v1177_v39 = vmax.f32 %v1129_v60, 0.0 }
 0x126   : > { %1203 = vst [vmem:[%s1860_s17 + $0xb8] sm:$0xff] %v1155_v61  ;;  %1227 = vst [vmem:[%s1860_s17 + $0x178] sm:$0xff] %v1179_v24 }
 0x127   : > { %1201 = vst [vmem:[%s1860_s17 + $0xa8] sm:$0xff] %v1153_v48  ;;  %1225 = vst [vmem:[%s1860_s17 + $0x168] sm:$0xff] %v1177_v39 }
 0x128 PF: > { %s13_s14 = sadd.s32 1, %s1627_s14   ;;  %s1962_s12 = smov %s1623_s13 }
 0x129   : > { %p10_p5 = scmp.ge.s32.totalorder %s13_s14, 4   ;;  %s1963_s13 = smov %s1965_s15 }
 0x12b   :  { %12 = sbr.rel (!%p10_p5) target bundleno = 2 (0x2), region = 68 }

</bundles_post_ra>
